<compile_context>
chip_gen: v6e
topology: v6e:2x2x1
jax: 0.10.0
libtpu: 0.0.40
codegen_flags: <defaults>
</compile_context>

<pallas_src>
import math

import jax
import jax.numpy as jnp
from jax.experimental import pallas as pl
from jax.experimental.pallas import tpu as pltpu

HID1 = 128          # fc1 width (lane aligned already)
HID2 = 64           # fc2 width (sublane aligned; used unpadded as a K dim)
LANE = 128
SUBLANE = 8


def _round_up(n, m):
    return ((n + m - 1) // m) * m


def dqn_mlp_kernel(x_ref, w1_ref, b1_ref, w2_ref, b2_ref, w3_ref, b3_ref, o_ref):
    # All-f32 path (matches the f32 PyTorch module); MXU accumulation in f32.
    x = x_ref[...]                                                   # (tile, in)
    h1 = jnp.dot(x, w1_ref[...], preferred_element_type=jnp.float32)
    h1 = jnp.maximum(h1 + b1_ref[...], 0.0)                          # (tile, 128)
    h2 = jnp.dot(h1, w2_ref[...], preferred_element_type=jnp.float32)
    h2 = jnp.maximum(h2 + b2_ref[...], 0.0)                          # (tile, 64)
    out = jnp.dot(h2, w3_ref[...], preferred_element_type=jnp.float32) + b3_ref[...]
    # Drop the zero-padded output columns before the store: the HBM output is
    # the logical (tile, output_size) slab, not the 128-wide padded one.
    o_ref[...] = out[:, : o_ref.shape[1]].astype(o_ref.dtype)


def dqn_forward(x, params, output_size, *, batch_tile=None):
    """x: (B, input_size) f32. Returns (B, output_size) f32 Q-values."""
    w1, b1 = params["w1"], params["b1"]
    w2, b2 = params["w2"], params["b2"]
    w3, b3 = params["w3"], params["b3"]

    B, in_size = x.shape

    # cdiv-balanced batch tile, capped at 1024 rows; force >=2 grid steps when B
    # allows so the "parallel" axis shards across both v7x TensorCores.
    if batch_tile is None:
        cap = 1024
        n_tiles = max(pl.cdiv(B, cap), 1)
        if n_tiles == 1 and B >= 2 * SUBLANE:
            n_tiles = 2
        batch_tile = _round_up(pl.cdiv(B, n_tiles), SUBLANE)
    else:
        batch_tile = _round_up(batch_tile, SUBLANE)

    grid = (pl.cdiv(B, batch_tile),)

    def resident(arr):
        # Weights/biases: constant block index -> fetched once, VMEM-resident
        # across every batch tile.
        return pl.BlockSpec(arr.shape, lambda i: (0, 0))

    out_pad = w3.shape[1]
    flops = 2 * B * (in_size * HID1 + HID1 * HID2 + HID2 * out_pad)
    bytes_accessed = (
        x.size * x.dtype.itemsize
        + sum(a.size * a.dtype.itemsize for a in (w1, b1, w2, b2, w3, b3))
        + B * output_size * 4
    )

    return pl.pallas_call(
        dqn_mlp_kernel,
        out_shape=jax.ShapeDtypeStruct((B, output_size), jnp.float32),
        grid=grid,
        in_specs=[
            # x: last dim equals the full array dim (no 128 alignment needed),
            # batch dim tiled in SUBLANE multiples; partial last tile handled by
            # Pallas (garbage rows only affect dropped OOB output rows).
            pl.BlockSpec((batch_tile, in_size), lambda i: (i, 0)),
            resident(w1), resident(b1),
            resident(w2), resident(b2),
            resident(w3), resident(b3),
        ],
        # Logical-width output: last dim == full array dim (output_size).
        out_specs=pl.BlockSpec((batch_tile, output_size), lambda i: (i, 0)),
        compiler_params=pltpu.CompilerParams(
            dimension_semantics=("parallel",),
        ),
        cost_estimate=pl.CostEstimate(
            flops=flops, transcendentals=0, bytes_accessed=bytes_accessed
        ),
    )(x, w1, b1, w2, b2, w3, b3)


def init_params(key, input_size, output_size):
    """nn.Linear default init U(-1/sqrt(fan_in), 1/sqrt(fan_in)) on logical dims.

    Everything stays f32. Only fc3's output (lane) dim is zero-padded to 128;
    the pad columns are exactly zero and sliced off inside the kernel.
    """
    out_pad = _round_up(output_size, LANE)

    def linear(key, fan_in, fan_out, pad_out=None):
        kw, kb = jax.random.split(key)
        bound = 1.0 / math.sqrt(fan_in)
        w = jax.random.uniform(kw, (fan_in, fan_out), jnp.float32, -bound, bound)
        b = jax.random.uniform(kb, (1, fan_out), jnp.float32, -bound, bound)
        if pad_out is not None and pad_out > fan_out:
            w = jnp.pad(w, ((0, 0), (0, pad_out - fan_out)))
            b = jnp.pad(b, ((0, 0), (0, pad_out - fan_out)))
        return w, b

    k1, k2, k3 = jax.random.split(key, 3)
    w1, b1 = linear(k1, input_size, HID1)              # (in, 128)
    w2, b2 = linear(k2, HID1, HID2)                    # (128, 64)
    w3, b3 = linear(k3, HID2, output_size, out_pad)    # (64, 128), zero-padded cols
    return {"w1": w1, "b1": b1, "w2": w2, "b2": b2, "w3": w3, "b3": b3}


def reference_forward(x, p, output_size):
    """Pure-JAX f32 reference (HIGHEST precision matmuls)."""
    hp = jax.lax.Precision.HIGHEST
    h1 = jnp.maximum(jnp.dot(x, p["w1"], precision=hp) + p["b1"], 0.0)
    h2 = jnp.maximum(jnp.dot(h1, p["w2"], precision=hp) + p["b2"], 0.0)
    out = jnp.dot(h2, p["w3"], precision=hp) + p["b3"]
    return out[:, :output_size]


if __name__ == "__main__":
    input_size = 16
    output_size = 4

    key = jax.random.PRNGKey(0)
    kx, kp, kx2 = jax.random.split(key, 3)
    params = init_params(kp, input_size, output_size)

    # Small batch (single tile, batch dim smaller than the tile).
    batch = 2
    x = jax.random.normal(kx, (batch, input_size), dtype=jnp.float32)
    out = jax.block_until_ready(dqn_forward(x, params, output_size))
    ref = reference_forward(x, params, output_size)
    assert out.shape == (batch, output_size)
    assert jnp.allclose(out, ref, atol=5e-3, rtol=5e-3), "mismatch vs JAX reference (B=2)"

    # Larger batch: exercises a multi-step grid with a partial last tile.
    batch2 = 300
    x2 = jax.random.normal(kx2, (batch2, input_size), dtype=jnp.float32)
    out2 = jax.block_until_ready(dqn_forward(x2, params, output_size))
    ref2 = reference_forward(x2, params, output_size)
    assert out2.shape == (batch2, output_size)
    assert jnp.allclose(out2, ref2, atol=5e-3, rtol=5e-3), "mismatch vs JAX reference (B=300)"

    print("KERNEL_OK")
</pallas_src>

<mosaic_0001>
module attributes {stable_mosaic.version = 11 : i64} {
  func.func @dqn_mlp_kernel(%arg0: i32, %arg1: memref<8x16xf32, #tpu.memory_space<vmem>>, %arg2: memref<16x128xf32, #tpu.memory_space<vmem>>, %arg3: memref<1x128xf32, #tpu.memory_space<vmem>>, %arg4: memref<128x64xf32, #tpu.memory_space<vmem>>, %arg5: memref<1x64xf32, #tpu.memory_space<vmem>>, %arg6: memref<64x128xf32, #tpu.memory_space<vmem>>, %arg7: memref<1x128xf32, #tpu.memory_space<vmem>>, %arg8: memref<8x4xf32, #tpu.memory_space<vmem>>) attributes {dimension_semantics = [#tpu.dimension_semantics<parallel>], iteration_bounds = array<i64: 1>, scalar_prefetch = 0 : i64, scratch_operands = 0 : i64, tpu.core_type = #tpu.core_type<tc>, window_params = [{transform_indices = @transform_0, window_bounds = array<i64: 8, 16>}, {pipeline_mode = #tpu.pipeline_mode<synchronous>, transform_indices = @transform_1, window_bounds = array<i64: 16, 128>}, {pipeline_mode = #tpu.pipeline_mode<synchronous>, transform_indices = @transform_2, window_bounds = array<i64: 1, 128>}, {pipeline_mode = #tpu.pipeline_mode<synchronous>, transform_indices = @transform_3, window_bounds = array<i64: 128, 64>}, {pipeline_mode = #tpu.pipeline_mode<synchronous>, transform_indices = @transform_4, window_bounds = array<i64: 1, 64>}, {pipeline_mode = #tpu.pipeline_mode<synchronous>, transform_indices = @transform_5, window_bounds = array<i64: 64, 128>}, {pipeline_mode = #tpu.pipeline_mode<synchronous>, transform_indices = @transform_6, window_bounds = array<i64: 1, 128>}, {transform_indices = @transform_7, window_bounds = array<i64: 8, 4>}]} {
    %c0 = arith.constant 0 : index
    %c0_0 = arith.constant 0 : index
    %0 = vector.load %arg1[%c0, %c0_0] : memref<8x16xf32, #tpu.memory_space<vmem>>, vector<8x16xf32>
    %c0_1 = arith.constant 0 : index
    %c0_2 = arith.constant 0 : index
    %1 = vector.load %arg2[%c0_1, %c0_2] : memref<16x128xf32, #tpu.memory_space<vmem>>, vector<16x128xf32>
    %cst = arith.constant dense<0.000000e+00> : vector<8x128xf32>
    %2 = tpu.matmul %0, %1, %cst {dimension_numbers = #tpu.dot_dimension_numbers<[1], [0], [0], [1], [0, 0, 1, 1], [], []>} : vector<8x16xf32>, vector<16x128xf32>, vector<8x128xf32> -> vector<8x128xf32>
    %c0_3 = arith.constant 0 : index
    %c0_4 = arith.constant 0 : index
    %3 = vector.load %arg3[%c0_3, %c0_4] : memref<1x128xf32, #tpu.memory_space<vmem>>, vector<1x128xf32>
    %4 = vector.broadcast %3 : vector<1x128xf32> to vector<8x128xf32>
    %5 = arith.addf %2, %4 : vector<8x128xf32>
    %cst_5 = arith.constant 0.000000e+00 : f32
    %6 = vector.broadcast %cst_5 : f32 to vector<8x128xf32>
    %7 = arith.maximumf %5, %6 : vector<8x128xf32>
    %c0_6 = arith.constant 0 : index
    %c0_7 = arith.constant 0 : index
    %8 = vector.load %arg4[%c0_6, %c0_7] : memref<128x64xf32, #tpu.memory_space<vmem>>, vector<128x64xf32>
    %cst_8 = arith.constant dense<0.000000e+00> : vector<8x64xf32>
    %9 = tpu.matmul %7, %8, %cst_8 {dimension_numbers = #tpu.dot_dimension_numbers<[1], [0], [0], [1], [0, 0, 1, 1], [], []>} : vector<8x128xf32>, vector<128x64xf32>, vector<8x64xf32> -> vector<8x64xf32>
    %c0_9 = arith.constant 0 : index
    %c0_10 = arith.constant 0 : index
    %10 = vector.load %arg5[%c0_9, %c0_10] : memref<1x64xf32, #tpu.memory_space<vmem>>, vector<1x64xf32>
    %11 = vector.broadcast %10 : vector<1x64xf32> to vector<8x64xf32>
    %12 = arith.addf %9, %11 : vector<8x64xf32>
    %cst_11 = arith.constant 0.000000e+00 : f32
    %13 = vector.broadcast %cst_11 : f32 to vector<8x64xf32>
    %14 = arith.maximumf %12, %13 : vector<8x64xf32>
    %c0_12 = arith.constant 0 : index
    %c0_13 = arith.constant 0 : index
    %15 = vector.load %arg6[%c0_12, %c0_13] : memref<64x128xf32, #tpu.memory_space<vmem>>, vector<64x128xf32>
    %cst_14 = arith.constant dense<0.000000e+00> : vector<8x128xf32>
    %16 = tpu.matmul %14, %15, %cst_14 {dimension_numbers = #tpu.dot_dimension_numbers<[1], [0], [0], [1], [0, 0, 1, 1], [], []>} : vector<8x64xf32>, vector<64x128xf32>, vector<8x128xf32> -> vector<8x128xf32>
    %c0_15 = arith.constant 0 : index
    %c0_16 = arith.constant 0 : index
    %17 = vector.load %arg7[%c0_15, %c0_16] : memref<1x128xf32, #tpu.memory_space<vmem>>, vector<1x128xf32>
    %18 = vector.broadcast %17 : vector<1x128xf32> to vector<8x128xf32>
    %19 = arith.addf %16, %18 : vector<8x128xf32>
    %20 = vector.extract_strided_slice %19 {offsets = [0, 0], sizes = [8, 4], strides = [1, 1]} : vector<8x128xf32> to vector<8x4xf32>
    %c0_17 = arith.constant 0 : index
    %c0_18 = arith.constant 0 : index
    %21 = vector.load %arg8[%c0_17, %c0_18] : memref<8x4xf32, #tpu.memory_space<vmem>>, vector<8x4xf32>
    tpu.vector_store %arg8[%c0_17, %c0_18], %20 {strides = array<i32>} : memref<8x4xf32, #tpu.memory_space<vmem>>, vector<8x4xf32>,
    return
  }
  func.func @transform_0(%arg0: i32) -> (i32, i32) {
    %c0_i32 = arith.constant 0 : i32
    %c0_i32_0 = arith.constant 0 : i32
    return %arg0, %c0_i32 : i32, i32
  }
  func.func @transform_1(%arg0: i32) -> (i32, i32) {
    %c0_i32 = arith.constant 0 : i32
    %c0_i32_0 = arith.constant 0 : i32
    %c0_i32_1 = arith.constant 0 : i32
    return %c0_i32, %c0_i32_0 : i32, i32
  }
  func.func @transform_2(%arg0: i32) -> (i32, i32) {
    %c0_i32 = arith.constant 0 : i32
    %c0_i32_0 = arith.constant 0 : i32
    %c0_i32_1 = arith.constant 0 : i32
    return %c0_i32, %c0_i32_0 : i32, i32
  }
  func.func @transform_3(%arg0: i32) -> (i32, i32) {
    %c0_i32 = arith.constant 0 : i32
    %c0_i32_0 = arith.constant 0 : i32
    %c0_i32_1 = arith.constant 0 : i32
    return %c0_i32, %c0_i32_0 : i32, i32
  }
  func.func @transform_4(%arg0: i32) -> (i32, i32) {
    %c0_i32 = arith.constant 0 : i32
    %c0_i32_0 = arith.constant 0 : i32
    %c0_i32_1 = arith.constant 0 : i32
    return %c0_i32, %c0_i32_0 : i32, i32
  }
  func.func @transform_5(%arg0: i32) -> (i32, i32) {
    %c0_i32 = arith.constant 0 : i32
    %c0_i32_0 = arith.constant 0 : i32
    %c0_i32_1 = arith.constant 0 : i32
    return %c0_i32, %c0_i32_0 : i32, i32
  }
  func.func @transform_6(%arg0: i32) -> (i32, i32) {
    %c0_i32 = arith.constant 0 : i32
    %c0_i32_0 = arith.constant 0 : i32
    %c0_i32_1 = arith.constant 0 : i32
    return %c0_i32, %c0_i32_0 : i32, i32
  }
  func.func @transform_7(%arg0: i32) -> (i32, i32) {
    %c0_i32 = arith.constant 0 : i32
    %c0_i32_0 = arith.constant 0 : i32
    return %arg0, %c0_i32 : i32, i32
  }
}

</mosaic_0001>

<bundles_post_ra>
// kernel: tpu_custom_call.1
= control target key start
LH: loop header
LB: loop body
LE: loop exit
PB: predicated region body
PF: predicated region fallthrough
CT: control target
= control target key end

     0   :  { %12 = vsyncpa [#allocation3], 0  ;;  %v435_v1 = vmov 0.0   ;;  %vm436_vm0 = vmmov 0   ;;  %vm37_vm1 = vcmask 130048   ;;  %vm221_vm2 = vcmask 523264   ;;  %s605_s0 = inlined_call_operand.vmem [shape: f32[2,16], index: 0, kind: input, shape index: {}]   ;;  %s606_s1 = inlined_call_operand.vmem [shape: f32[16,128], index: 1, kind: input, shape index: {}]   ;;  %s607_s2 = inlined_call_operand.vmem [shape: f32[1,128], index: 2, kind: input, shape index: {}]   ;;  %s608_s3 = inlined_call_operand.vmem [shape: f32[128,64], index: 3, kind: input, shape index: {}]   ;;  %s609_s4 = inlined_call_operand.vmem [shape: f32[1,64], index: 4, kind: input, shape index: {}]   ;;  %s610_s5 = inlined_call_operand.vmem [shape: f32[64,128], index: 5, kind: input, shape index: {}]   ;;  %s611_s6 = inlined_call_operand.vmem [shape: f32[1,128], index: 6, kind: input, shape index: {}]   ;;  %s612_s7 = inlined_call_operand.hbm [shape: f32[2,4], index: 7, kind: output, shape index: {}]  }
   0x1   :  { %v29_v0 = vld [vmem:[%s606_s1 + $0x8] sm:$0xff]  ;;  %347 = vmatprep.subr.mxu0 %v435_v1  ;;  %v28_v2 = vld [vmem:[%s606_s1] sm:$0xff]  ;;  %351 = vmatprep.mubr.msk.f32.mxu0 %vm436_vm0, %v435_v1  ;;  %v127_v3 = vld [vmem:[%s608_s3 + $0x78] sm:$0xff]  ;;  %vm295_vm3 = vcmask 31744  }
   0x2   :  { %348 = vmatpush3.msra.mxu0 %v29_v0  ;;  %v27_v4 = vld [vmem:[%s605_s0] sm:$0xff]  ;;  %354 = vmatprep.subr.mxu1 %v435_v1  ;;  %v126_v5 = vld [vmem:[%s608_s3 + $0x70] sm:$0xff]  ;;  %v125_v6 = vld [vmem:[%s608_s3 + $0x68] sm:$0xff] }
   0x3   :  { %349 = vmatprep.subr.mxu0 %v435_v1  ;;  %355 = vmatpush3.msra.mxu1 %v127_v3  ;;  %v124_v7 = vld [vmem:[%s608_s3 + $0x60] sm:$0xff]  ;;  %v123_v8 = vld [vmem:[%s608_s3 + $0x58] sm:$0xff]  ;;  %v122_v9 = vld [vmem:[%s608_s3 + $0x50] sm:$0xff] }
   0x4   :  { %350 = vmatpush3.msra.mxu0 %v28_v2  ;;  %356 = vmatprep.subr.mxu1 %v435_v1  ;;  %v121_v10 = vld [vmem:[%s608_s3 + $0x48] sm:$0xff]  ;;  %v120_v11 = vld [vmem:[%s608_s3 + $0x40] sm:$0xff]  ;;  %v119_v12 = vld [vmem:[%s608_s3 + $0x38] sm:$0xff] }
   0x5   :  { %352 = vmatmul.mubr.msk.f32.vlgmr.msra.gmra.mxu0 %vm37_vm1, %v27_v4  ;;  %357 = vmatpush3.msra.mxu1 %v126_v5  ;;  %v118_v13 = vld [vmem:[%s608_s3 + $0x30] sm:$0xff]  ;;  %v117_v14 = vld [vmem:[%s608_s3 + $0x28] sm:$0xff]  ;;  %v116_v15 = vld [vmem:[%s608_s3 + $0x20] sm:$0xff] }
   0x6   :  { %358 = vmatprep.subr.mxu1 %v435_v1  ;;  %386 = vmatprep.mubr.msk.f32.mxu1 %vm436_vm0, %v435_v1  ;;  %v115_v16 = vld [vmem:[%s608_s3 + $0x18] sm:$0xff]  ;;  %v114_v17 = vld [vmem:[%s608_s3 + $0x10] sm:$0xff]  ;;  %v113_v18 = vld [vmem:[%s608_s3 + $0x8] sm:$0xff] }
   0x7   :  { %359 = vmatpush3.msra.mxu1 %v125_v6  ;;  %389 = vmatprep.subr.mxu0 %v435_v1  ;;  %v112_v19 = vld [vmem:[%s608_s3] sm:$0xff]  ;;  %v213_v20 = vld [vmem:[%s610_s5 + $0x38] sm:$0xff]  ;;  %v212_v21 = vld [vmem:[%s610_s5 + $0x30] sm:$0xff] }
   0x8   :  { %360 = vmatprep.subr.mxu1 %v435_v1  ;;  %405 = vmatprep.mubr.msk.f32.mxu0 %vm436_vm0, %v435_v1  ;;  %v211_v22 = vld [vmem:[%s610_s5 + $0x28] sm:$0xff]  ;;  %v210_v23 = vld [vmem:[%s610_s5 + $0x20] sm:$0xff]  ;;  %v209_v24 = vld [vmem:[%s610_s5 + $0x18] sm:$0xff] }
   0x9   :  { %361 = vmatpush3.msra.mxu1 %v124_v7  ;;  %390 = vmatpush3.msra.mxu0 %v213_v20  ;;  %v313_v25 = vld [vmem:[%s607_s2] ss:$0 sm:$0xff]  ;;  %v208_v30 = vld [vmem:[%s610_s5 + $0x10] sm:$0xff]  ;;  %v207_v31 = vld [vmem:[%s610_s5 + $0x8] sm:$0xff] }
   0xa   :  { %362 = vmatprep.subr.mxu1 %v435_v1  ;;  %391 = vmatprep.subr.mxu0 %v435_v1  ;;  %v206_v32 = vld [vmem:[%s610_s5] sm:$0xff] }
   0xb   :  { %363 = vmatpush3.msra.mxu1 %v123_v8  ;;  %392 = vmatpush3.msra.mxu0 %v212_v21  ;;  %v315_v33 = vld [vmem:[%s609_s4] ss:$0 sm:$0xff] }
   0xc   :  { %364 = vmatprep.subr.mxu1 %v435_v1  ;;  %393 = vmatprep.subr.mxu0 %v435_v1  ;;  %v316_v38 = vld [vmem:[%s611_s6] ss:$0 sm:$0xff] }
   0xd   :  { %365 = vmatpush3.msra.mxu1 %v122_v9  ;;  %394 = vmatpush3.msra.mxu0 %v211_v22 }
   0xe   :  { %366 = vmatprep.subr.mxu1 %v435_v1  ;;  %395 = vmatprep.subr.mxu0 %v435_v1 }
   0xf   :  { %367 = vmatpush3.msra.mxu1 %v121_v10  ;;  %396 = vmatpush3.msra.mxu0 %v210_v23 }
  0x10   :  { %368 = vmatprep.subr.mxu1 %v435_v1  ;;  %397 = vmatprep.subr.mxu0 %v435_v1 }
  0x11   :  { %369 = vmatpush3.msra.mxu1 %v120_v11  ;;  %398 = vmatpush3.msra.mxu0 %v209_v24 }
  0x12   :  { %370 = vmatprep.subr.mxu1 %v435_v1  ;;  %399 = vmatprep.subr.mxu0 %v435_v1 }
  0x13   :  { %371 = vmatpush3.msra.mxu1 %v119_v12  ;;  %400 = vmatpush3.msra.mxu0 %v208_v30 }
  0x14   :  { %372 = vmatprep.subr.mxu1 %v435_v1  ;;  %401 = vmatprep.subr.mxu0 %v435_v1 }
  0x15   :  { %373 = vmatpush3.msra.mxu1 %v118_v13  ;;  %402 = vmatpush3.msra.mxu0 %v207_v31 }
  0x16   :  { %374 = vmatprep.subr.mxu1 %v435_v1  ;;  %403 = vmatprep.subr.mxu0 %v435_v1 }
  0x17   :  { %375 = vmatpush3.msra.mxu1 %v117_v14  ;;  %404 = vmatpush3.msra.mxu0 %v206_v32 }
  0x18   :  { %376 = vmatprep.subr.mxu1 %v435_v1 }
  0x19   :  { %377 = vmatpush3.msra.mxu1 %v116_v15 }
  0x1a   :  { %378 = vmatprep.subr.mxu1 %v435_v1 }
  0x1b   :  { %379 = vmatpush3.msra.mxu1 %v115_v16 }
  0x1c   :  { %380 = vmatprep.subr.mxu1 %v435_v1 }
  0x1d   :  { %381 = vmatpush3.msra.mxu1 %v114_v17 }
  0x1e   :  { %382 = vmatprep.subr.mxu1 %v435_v1 }
  0x1f   :  { %383 = vmatpush3.msra.mxu1 %v113_v18 }
  0x20   :  { %384 = vmatprep.subr.mxu1 %v435_v1 }
  0x21   :  { %385 = vmatpush3.msra.mxu1 %v112_v19 }
  0xc5   :  { %v107_v26 = vpop.f32.mrf.mxu0 }
  0xc6   :  { %v108_v27 = vadd.f32 %v313_v25, %v107_v26 }
  0xc7   :  { %v353_v28 = vpop.f32.mrf.mxu0 }
  0xc8   :  { %v111_v29 = vmax.f32 %v108_v27, 0.0 }
  0xca   :  { %387 = vmatmul.mubr.f32.vlgmr.msra.gmra.mxu1 %v111_v29 }
 0x18a   :  { %v201_v34 = vpop.f32.mrf.mxu1 }
 0x18b   :  { %v202_v35 = vadd.f32 %v315_v33, %v201_v34 }
 0x18c   :  { %v388_v36 = vpop.f32.mrf.mxu1 }
 0x18d   :  { %v205_v37 = vmax.f32 %v202_v35, 0.0 }
 0x18f   :  { %406 = vmatmul.mubr.msk.f32.vlgmr.msra.gmra.mxu0 %vm221_vm2, %v205_v37 }
 0x24f   :  { %v291_v39 = vpop.f32.mrf.mxu0 }
 0x250   :  { %v292_v40 = vadd.f32 %v316_v38, %v291_v39 }
 0x251   :  { %v407_v41 = vpop.f32.mrf.mxu0 }
 0x252   :  { %296 = vst.msk [vmem:[#allocation2] sm:$0xff] %vm295_vm3, %v292_v40 }
 0x253   :  { %301 = vsyncadd [#allocation3], 96  ;;  %s437_s5 = smov [#allocation2]  }
 0x254   :  { %s302_s9 = sshll.u32 %s437_s5, 4  ;;  %s303_s9 = int_to_ptr.vmem [resolvable:$true] %s302_s9 }
 0x255   :  { %s413_s4 = scalar_lea.vmem %s303_s9, 32  ;;  %s417_s10 = scalar_lea.vmem %s303_s9, 128 }
 0x256   :  { %p414_p0 = scmp.ne.s32.totalorder %s303_s9, %s413_s4  ;;  %p418_p1 = scmp.lt.s32.totalorder %s303_s9, %s303_s9 }
 0x257   :  { %p419_p2 = scmp.lt.s32.totalorder %s417_s10, %s413_s4 }
 0x259   :  { %p420_p3 = por %p419_p2, %p418_p1 }
 0x25b   :  { %p421_p4 = pnand %p420_p3, %p414_p0 }
 0x25d   :  { %424 = shalt.err (!%p421_p4)
}
 0x25e   :  { %s438_s1 = smov 32   ;;  %s439_s11 = smov 2  }
 0x25f   :  { %308 = dma.vmem_to_hbm [thread:$0]  %s303_s9, 32, %s612_s7, [#allocation3], %s438_s1, %s438_s1, %s439_s11  }
 0x260   :  { %433 = dma.done.wait [#allocation3], 128  }
 0x261   :  { %434 = vsyncadd [#allocation3], 4294967168 }
 0x262   :  { %312 = vsyncpa [#allocation3], 1 }

</bundles_post_ra>
